<compile_context>
chip_gen: v6e
topology: v6e:2x2x1
jax: 0.10.0
libtpu: 0.0.40
codegen_flags: <defaults>
</compile_context>

<pallas_src>
import functools

import jax
import jax.numpy as jnp
import numpy as np
from jax.experimental import pallas as pl
from jax.experimental.pallas import tpu as pltpu


def _cdiv(a, b):
    return -(-a // b)


def _round_up(a, b):
    return _cdiv(a, b) * b


def _tv_kernel(masks_ref, x_ref, out_ref, *, h, w):
    """Partial TV sum for one block of whole channel images.

    masks_ref: (2, H*W) f32 VMEM — row 0: horizontal mask, row 1: vertical mask.
    x_ref:     (CB, H*W) native-dtype VMEM — CB channel images on the lane axis.
    out_ref:   (1, 1) f32 SMEM — this grid step's partial sum.
    """
    hw = h * w
    x = x_ref[...].astype(jnp.float32)              # upcast in VMEM, not HBM
    masks = masks_ref[...]
    mask_h = masks[0:1, :]                          # (1, hw), broadcasts on sublanes
    mask_v = masks[1:2, :]

    # Horizontal: neighbour x[i, j+1] lives at flat position p+1 (lane rotate).
    x_right = pltpu.roll(x, hw - 1, axis=1)
    s = jnp.sum(jnp.abs(x - x_right) * mask_h)

    # Vertical (x_right / horizontal diffs are dead by now): neighbour at p+w.
    x_down = pltpu.roll(x, hw - w, axis=1)
    out_ref[0, 0] = s + jnp.sum(jnp.abs(x - x_down) * mask_v)


def _vmem_plan():
    """Return (f32 working-tile budget bytes, scoped VMEM limit bytes)."""
    try:
        cap = int(pltpu.get_tpu_info().vmem_capacity_bytes)
    except Exception:  # be robust if the query is unavailable
        cap = 64 << 20
    if cap >= (100 << 20):          # v5e / v6e: 128 MiB physical VMEM
        return 4 << 20, 64 << 20
    return 2 << 20, 32 << 20        # v7x: 64 MiB physical VMEM per TC


def _pick_channel_block(bc, hw, sublane_mult, tile_budget_bytes):
    """Channel-row block: sublane-multiple, f32 working tile within budget,
    and (when enough rows exist) small enough that grid >= 2 (megacore)."""
    per_row_f32 = hw * 4
    cb = (tile_budget_bytes // per_row_f32) // sublane_mult * sublane_mult
    cb = max(cb, sublane_mult)
    cb = min(cb, _round_up(bc, sublane_mult))
    if bc > sublane_mult:  # prefer grid >= 2 so v7x's two TCs both get work
        cb = min(cb, max(sublane_mult, _round_up(_cdiv(bc, 2), sublane_mult)))
    return cb


def tv_loss(x, *, channel_block=None):
    """Pallas implementation of TVLoss.forward for NCHW inputs (scalar f32)."""
    assert x.ndim == 4
    b, c, h, w = x.shape
    bc = b * c
    hw = h * w

    itemsize = jnp.dtype(x.dtype).itemsize
    sublane_mult = max(8, 32 // itemsize)            # 8 (f32) / 16 (bf16) / 32 (int8)
    tile_budget, vmem_limit = _vmem_plan()

    # Free reshape for contiguous NCHW; dtype is left untouched (cast in-kernel).
    x2 = x.reshape(bc, hw)

    if channel_block is None:
        cb = _pick_channel_block(bc, hw, sublane_mult, tile_budget)
    else:
        cb = int(channel_block)
        assert cb > 0 and (cb % sublane_mult == 0 or cb >= bc), (cb, sublane_mult)

    # Pad with zero channel rows (exact: zero images add 0 to TV).
    padded_bc = _round_up(bc, cb)
    if padded_bc != bc:
        x2 = jnp.pad(x2, ((0, padded_bc - bc), (0, 0)))
    grid = padded_bc // cb

    # Tiny resident mask rows: row 0 kills the wrap column, row 1 the wrap rows.
    p = jnp.arange(hw, dtype=jnp.int32)
    masks = jnp.stack(
        [((p % w) < (w - 1)).astype(jnp.float32),
         (p < (h - 1) * w).astype(jnp.float32)], axis=0)   # (2, hw)

    partials = pl.pallas_call(
        functools.partial(_tv_kernel, h=h, w=w),
        out_shape=jax.ShapeDtypeStruct((grid, 1), jnp.float32),
        grid=(grid,),
        in_specs=[
            pl.BlockSpec((2, hw), lambda i: (0, 0)),        # masks (resident)
            pl.BlockSpec((cb, hw), lambda i: (i, 0)),       # channel rows
        ],
        out_specs=pl.BlockSpec((1, 1), lambda i: (i, 0),
                               memory_space=pltpu.MemorySpace.SMEM),
        compiler_params=pltpu.CompilerParams(
            dimension_semantics=("parallel",),
            vmem_limit_bytes=vmem_limit),
    )(masks, x2)

    # Raw partial sums (not per-tile means) -> unbiased final sum.
    return jnp.sum(partials)


# ------------------------- reference (plain JAX) ----------------------------
def _tv_ref(x):
    x = x.astype(jnp.float32)
    return (jnp.sum(jnp.abs(x[:, :, :, :-1] - x[:, :, :, 1:])) +
            jnp.sum(jnp.abs(x[:, :, :-1, :] - x[:, :, 1:, :])))


if __name__ == "__main__":
    key = jax.random.PRNGKey(0)
    k1, k2, k3 = jax.random.split(key, 3)

    # Primary test: small shape implied by the module (B=2, C=4, 16x16), f32.
    x = jax.random.uniform(k1, (2, 4, 16, 16), dtype=jnp.float32)
    out = tv_loss(x)
    jax.block_until_ready(out)
    np.testing.assert_allclose(np.asarray(out), np.asarray(_tv_ref(x)),
                               rtol=1e-5, atol=1e-4)

    # Multi-block grids: default picker (megacore cap -> grid=2) and an
    # explicit 8-channel block (grid=4) to exercise the partial-sum path.
    y = jax.random.uniform(k2, (4, 8, 16, 16), dtype=jnp.float32)
    for blk in (None, 8):
        out2 = tv_loss(y, channel_block=blk)
        jax.block_until_ready(out2)
        np.testing.assert_allclose(np.asarray(out2), np.asarray(_tv_ref(y)),
                                   rtol=1e-5, atol=1e-4)

    # Native-dtype path + zero-row padding (bf16 sublane multiple 16 > B*C=8).
    z = jax.random.uniform(k3, (2, 4, 16, 16), dtype=jnp.float32).astype(jnp.bfloat16)
    out3 = tv_loss(z)
    jax.block_until_ready(out3)
    np.testing.assert_allclose(np.asarray(out3), np.asarray(_tv_ref(z)),
                               rtol=1e-4, atol=1e-3)

    print("KERNEL_OK")
</pallas_src>

<mosaic_0001>
module attributes {stable_mosaic.version = 11 : i64} {
  func.func @_tv_kernel(%arg0: i32, %arg1: memref<2x256xf32, #tpu.memory_space<vmem>>, %arg2: memref<8x256xf32, #tpu.memory_space<vmem>>, %arg3: memref<1x1xf32, #tpu.memory_space<smem>>) attributes {dimension_semantics = [#tpu.dimension_semantics<parallel>], iteration_bounds = array<i64: 1>, scalar_prefetch = 0 : i64, scratch_operands = 0 : i64, tpu.core_type = #tpu.core_type<tc>, window_params = [{pipeline_mode = #tpu.pipeline_mode<synchronous>, transform_indices = @transform_0, window_bounds = array<i64: 2, 256>}, {transform_indices = @transform_1, window_bounds = array<i64: 8, 256>}, {transform_indices = @transform_2, window_bounds = array<i64: 1, 1>}]} {
    %c0 = arith.constant 0 : index
    %c0_0 = arith.constant 0 : index
    %0 = vector.load %arg2[%c0, %c0_0] : memref<8x256xf32, #tpu.memory_space<vmem>>, vector<8x256xf32>
    %c0_1 = arith.constant 0 : index
    %c0_2 = arith.constant 0 : index
    %1 = vector.load %arg1[%c0_1, %c0_2] : memref<2x256xf32, #tpu.memory_space<vmem>>, vector<2x256xf32>
    %2 = vector.extract_strided_slice %1 {offsets = [0, 0], sizes = [1, 256], strides = [1, 1]} : vector<2x256xf32> to vector<1x256xf32>
    %3 = vector.extract_strided_slice %1 {offsets = [1, 0], sizes = [1, 256], strides = [1, 1]} : vector<2x256xf32> to vector<1x256xf32>
    %c255_i32 = arith.constant 255 : i32
    %4 = tpu.dynamic_rotate %0 by %c255_i32 dim 1 : vector<8x256xf32>, i32 -> vector<8x256xf32>
    %5 = arith.subf %0, %4 : vector<8x256xf32>
    %6 = math.absf %5 : vector<8x256xf32>
    %7 = vector.broadcast %2 : vector<1x256xf32> to vector<8x256xf32>
    %8 = arith.mulf %6, %7 : vector<8x256xf32>
    %9 = vector.shape_cast %8 : vector<8x256xf32> to vector<1x8x256xf32>
    %cst = arith.constant dense<0.000000e+00> : vector<1xf32>
    %10 = vector.multi_reduction <add>, %9, %cst [1, 2] : vector<1x8x256xf32> to vector<1xf32>
    %11 = vector.shape_cast %10 : vector<1xf32> to vector<1x1x1xf32>
    %12 = vector.extract %11[0, 0, 0] : f32 from vector<1x1x1xf32>
    %c240_i32 = arith.constant 240 : i32
    %13 = tpu.dynamic_rotate %0 by %c240_i32 dim 1 : vector<8x256xf32>, i32 -> vector<8x256xf32>
    %14 = arith.subf %0, %13 : vector<8x256xf32>
    %15 = math.absf %14 : vector<8x256xf32>
    %16 = vector.broadcast %3 : vector<1x256xf32> to vector<8x256xf32>
    %17 = arith.mulf %15, %16 : vector<8x256xf32>
    %18 = vector.shape_cast %17 : vector<8x256xf32> to vector<1x8x256xf32>
    %cst_3 = arith.constant dense<0.000000e+00> : vector<1xf32>
    %19 = vector.multi_reduction <add>, %18, %cst_3 [1, 2] : vector<1x8x256xf32> to vector<1xf32>
    %20 = vector.shape_cast %19 : vector<1xf32> to vector<1x1x1xf32>
    %21 = vector.extract %20[0, 0, 0] : f32 from vector<1x1x1xf32>
    %22 = arith.addf %12, %21 : f32
    %c0_4 = arith.constant 0 : index
    %c0_5 = arith.constant 0 : index
    %23 = memref.load %arg3[%c0_4, %c0_5] : memref<1x1xf32, #tpu.memory_space<smem>>
    memref.store %22, %arg3[%c0_4, %c0_5] : memref<1x1xf32, #tpu.memory_space<smem>>
    return
  }
  func.func @transform_0(%arg0: i32) -> (i32, i32) {
    %c0_i32 = arith.constant 0 : i32
    %c0_i32_0 = arith.constant 0 : i32
    %c0_i32_1 = arith.constant 0 : i32
    return %c0_i32, %c0_i32_0 : i32, i32
  }
  func.func @transform_1(%arg0: i32) -> (i32, i32) {
    %c0_i32 = arith.constant 0 : i32
    %c0_i32_0 = arith.constant 0 : i32
    return %arg0, %c0_i32 : i32, i32
  }
  func.func @transform_2(%arg0: i32) -> (i32, i32) {
    %c0_i32 = arith.constant 0 : i32
    %c0_i32_0 = arith.constant 0 : i32
    return %arg0, %c0_i32 : i32, i32
  }
}

</mosaic_0001>

<bundles_post_ra>
// kernel: tpu_custom_call.1
= control target key start
LH: loop header
LB: loop body
LE: loop exit
PB: predicated region body
PF: predicated region fallthrough
CT: control target
= control target key end

     0   :  { %7 = vsyncpa [#allocation3], 0  ;;  %s234_s0 = inlined_call_operand.hbm [shape: f32[2,256], index: 0, kind: input, shape index: {}]   ;;  %s235_s1 = inlined_call_operand.hbm [shape: f32[8,256], index: 1, kind: input, shape index: {}]   ;;  %s236_s2 = inlined_call_operand.hbm [shape: f32[1,1], index: 2, kind: output, shape index: {}]  }
   0x1   :  { %8 = vsyncpa [#allocation6], 0 }
   0x2   :  { %9 = vsyncpa [#allocation4], 0  ;;  %s205_s9 = smov [#allocation2]   ;;  %s206_s11 = smov [#allocation5]  }
   0x3   :  { %s16_s10 = sshll.u32 %s205_s9, 4  ;;  %s26_s12 = sshll.u32 %s206_s11, 4  ;;  %s17_s10 = int_to_ptr.vmem [resolvable:$true] %s16_s10  ;;  %s27_s12 = int_to_ptr.vmem [resolvable:$true] %s26_s12 }
   0x4   :  { %s159_s13 = scalar_lea.vmem %s17_s10, 64  ;;  %p164_p1 = scmp.lt.s32.totalorder %s17_s10, %s17_s10 }
   0x5   :  { %p160_p0 = scmp.ne.s32.totalorder %s17_s10, %s159_s13  ;;  %p165_p2 = scmp.lt.s32.totalorder %s159_s13, %s159_s13 }
   0x7   :  { %p166_p3 = por %p165_p2, %p164_p1 }
   0x9   :  { %p167_p4 = pnand %p166_p3, %p160_p0 }
   0xb   :  { %170 = shalt.err (!%p167_p4)
}
   0xc   :  { %19 = dma.hbm_to_vmem [thread:$0]  %s234_s0, 64, %s17_s10, [#allocation3]  }
   0xd   :  { %s179_s16 = scalar_lea.vmem %s27_s12, 256  ;;  %p184_p6 = scmp.lt.s32.totalorder %s27_s12, %s27_s12 }
   0xe   :  { %p180_p5 = scmp.ne.s32.totalorder %s27_s12, %s179_s16  ;;  %p185_p7 = scmp.lt.s32.totalorder %s179_s16, %s179_s16 }
  0x10   :  { %p186_p8 = por %p185_p7, %p184_p6 }
  0x12   :  { %p187_p9 = pnand %p186_p8, %p180_p5 }
  0x14   :  { %190 = shalt.err (!%p187_p9)
}
  0x15   :  { %29 = dma.hbm_to_vmem [thread:$0]  %s235_s1, 256, %s27_s12, [#allocation6]  }
  0x16   :  { %199 = dma.done.wait [#allocation3], 64  }
  0x17   :  { %200 = vsyncadd [#allocation3], 4294967232 }
  0x18   :  { %201 = dma.done.wait [#allocation6], 256  }
  0x19   :  { %202 = vsyncadd [#allocation6], 4294967040  ;;  %v36_v0 = vld [vmem:[#allocation5] sm:$0xff]  ;;  %s207_s19 = smov 112   ;;  %s208_s20 = smov 127   ;;  %v37_v1 = vld [vmem:[#allocation5 + $0x8] sm:$0xff]  ;;  %v43_v2 = vlaneseq }
  0x1a   :  { %83 = vrot.lane.b32.xlu1 %v36_v0, %s207_s19  ;;  %39 = vrot.lane.b32.xlu0 %v36_v0, %s208_s20  ;;  %v38_v7 = vld [vmem:[#allocation2] sm:$0xf]  ;;  %s209_s22 = smov [#allocation7]  }
  0x1b   :  { %v54_v3 = vshrl.u32 %v43_v2, 7  ;;  %v44_v8 = vand.u32 127, %v43_v2 }
  0x1d   :  { %v96_v4 = vsub.s32 1, %v54_v3  ;;  %v100_v5 = vsub.s32 3, %v54_v3  ;;  %v55_v6 = vsub.s32 0, %v54_v3  ;;  %v59_v9 = vsub.s32 2, %v54_v3 }
  0x1e   :  { %85 = vrot.lane.b32.xlu1 %v37_v1, %s207_s19  ;;  %41 = vrot.lane.b32.xlu0 %v37_v1, %s208_s20  ;;  %vm87_vm0 = vcmp.lt.s32.totalorder %v44_v8, 112  ;;  %vm45_vm1 = vcmp.lt.s32.totalorder %v44_v8, 127 }
  0x1f   :  { %v97_v12 = vrot.slane %v38_v7, %v96_v4  ;;  %v101_v13 = vrot.slane %v38_v7, %v100_v5  ;;  %v56_v14 = vrot.slane %v38_v7, %v55_v6  ;;  %v60_v15 = vrot.slane %v38_v7, %v59_v9 }
  0x21   :  { %v107_v18 = vrot.slane %v97_v12, %v96_v4  ;;  %v111_v19 = vrot.slane %v101_v13, %v96_v4  ;;  %v66_v20 = vrot.slane %v56_v14, %v55_v6  ;;  %v70_v29 = vrot.slane %v60_v15, %v55_v6 }
  0x8c   :  { %v84_v10 = vpop.permute.xlu1 %83  ;;  %v40_v11 = vpop.permute.xlu0 %39 }
  0x90   :  { %v86_v16 = vpop.permute.xlu1 %85  ;;  %v42_v17 = vpop.permute.xlu0 %41 }
  0x91   :  { %v88_v21 = vsel %vm87_vm0, %v84_v10, %v86_v16  ;;  %v89_v22 = vsel %vm87_vm0, %v86_v16, %v84_v10  ;;  %v46_v23 = vsel %vm45_vm1, %v40_v11, %v42_v17  ;;  %v47_v24 = vsel %vm45_vm1, %v42_v17, %v40_v11 }
  0x92   :  { %v90_v25 = vsub.f32 %v36_v0, %v88_v21  ;;  %v91_v26 = vsub.f32 %v37_v1, %v89_v22  ;;  %v48_v27 = vsub.f32 %v36_v0, %v46_v23  ;;  %v49_v28 = vsub.f32 %v37_v1, %v47_v24 }
  0x94   :  { %v92_v30 = vand.u32 2147483647, %v90_v25  ;;  %v93_v31 = vand.u32 2147483647, %v91_v26  ;;  %v50_v32 = vand.u32 2147483647, %v48_v27 }
  0x95   :  { %v51_v33 = vand.u32 2147483647, %v49_v28 }
  0x96   :  { %v112_v34 = vmul.f32 %v107_v18, %v92_v30  ;;  %v113_v35 = vmul.f32 %v111_v19, %v93_v31  ;;  %v71_v36 = vmul.f32 %v66_v20, %v50_v32 }
  0x97   :  { %v72_v37 = vmul.f32 %v70_v29, %v51_v33 }
  0x98   :  { %v114_v38 = vadd.f32 %v113_v35, %v112_v34 }
  0x99   :  { %v73_v39 = vadd.f32 %v72_v37, %v71_v36 }
  0x9a   :  { %115 = vadd.xlane.f32.xlu1 %v114_v38 }
  0x9b   :  { %74 = vadd.xlane.f32.xlu0 %v73_v39 }
 0x123   :  { %v116_v40 = vpop.xlane.xlu1 %115 }
 0x124   :  { %v117_v41 = vrot.slane %v116_v40, 4  ;;  %v75_v42 = vpop.xlane.xlu0 %74 }
 0x125   :  { %v76_v43 = vrot.slane %v75_v42, 4 }
 0x126   :  { %v118_v44 = vadd.f32 %v117_v41, %v116_v40 }
 0x127   :  { %v77_v45 = vadd.f32 %v76_v43, %v75_v42 }
 0x128   :  { %v119_v46 = vrot.slane %v118_v44, 2 }
 0x129   :  { %v78_v47 = vrot.slane %v77_v45, 2 }
 0x12a   :  { %v120_v48 = vadd.f32 %v119_v46, %v118_v44 }
 0x12b   :  { %v79_v49 = vadd.f32 %v78_v47, %v77_v45 }
 0x12c   :  { %v121_v50 = vrot.slane %v120_v48, 1 }
 0x12d   :  { %v80_v51 = vrot.slane %v79_v49, 1 }
 0x12e   :  { %v122_v52 = vadd.f32 %v121_v50, %v120_v48 }
 0x12f   :  { %v81_v53 = vadd.f32 %v80_v51, %v79_v49 }
 0x131   :  { %142 = vpush %v81_v53 }
 0x132   :  { %144 = vpush %v122_v52 }
 0x162   :  { %s143_s0 = spop %142 }
 0x163   :  { %s145_s1 = spop %144 }
 0x164   :  { %s124_s21 = sadd.f32 %s145_s1, %s143_s0 }
 0x166   :  { %126 = sst [smem:[#allocation7]] %s124_s21 }
 0x167   :  { %134 = dma.smem_to_hbm %s209_s22, 16, %s236_s2, [#allocation4]  }
 0x168   :  { %203 = dma.done.wait [#allocation4], 16  }
 0x169   :  { %204 = vsyncadd [#allocation4], 4294967280 }
 0x16a   :  { %138 = sfence }
 0x16b   :  { %139 = vsyncpa [#allocation3], 1 }
 0x16c   :  { %140 = vsyncpa [#allocation6], 1 }
 0x16d   :  { %141 = vsyncpa [#allocation4], 1 }

</bundles_post_ra>
